<compile_context>
chip_gen: v6e
topology: v6e:2x2x1
jax: 0.10.0
libtpu: 0.0.40
codegen_flags: <defaults>
</compile_context>

<pallas_src>
import functools

import jax
import jax.numpy as jnp
from jax.experimental import pallas as pl
from jax.experimental.pallas import tpu as pltpu

NUM_HIDDEN_SH = 64   # config['NUM_HIDDEN_SH']
IN_FEATURES = 2
OUT_FEATURES = 3

LANE = 128           # lane-padded hidden width used inside the kernel
OUT_PAD = 8          # lanes actually written back to HBM (>= OUT_FEATURES)

# ---- Packed weight slab (bf16, 392 x 128), zero-padded ----------------------
#   rows 0..1     : W1 (2 x 64  in cols 0:64)
#   rows 2..7     : zero padding (keeps the big weights 8-row aligned)
#   rows 8..135   : W2 (64 x 64 in [0:64, 0:64], zero elsewhere)
#   rows 136..263 : W3
#   rows 264..391 : W4 (64 x 3 in [0:64, 0:3])
W1_ROW = 0
W2_ROW = 8
W3_ROW = W2_ROW + LANE       # 136
W4_ROW = W3_ROW + LANE       # 264
WSLAB_ROWS = W4_ROW + LANE   # 392

# ---- Packed bias slab (f32, 8 x 128) ----------------------------------------
#   row k = bias of layer k+1 (b4 lives in cols 0:3), rows 4..7 zero.
BSLAB_ROWS = 8


def _round_up(n, m):
    return ((n + m - 1) // m) * m


def pack_weights(params):
    """Pack the four weight matrices into one zero-padded bf16 (392,128) slab."""
    (w1, _), (w2, _), (w3, _), (w4, _) = params
    slab = jnp.zeros((WSLAB_ROWS, LANE), jnp.float32)
    slab = slab.at[W1_ROW:W1_ROW + IN_FEATURES, :NUM_HIDDEN_SH].set(w1)
    slab = slab.at[W2_ROW:W2_ROW + NUM_HIDDEN_SH, :NUM_HIDDEN_SH].set(w2)
    slab = slab.at[W3_ROW:W3_ROW + NUM_HIDDEN_SH, :NUM_HIDDEN_SH].set(w3)
    slab = slab.at[W4_ROW:W4_ROW + NUM_HIDDEN_SH, :OUT_FEATURES].set(w4)
    return slab.astype(jnp.bfloat16)


def pack_biases(params):
    """Pack the four bias vectors into one zero-padded f32 (8,128) slab."""
    (_, b1), (_, b2), (_, b3), (_, b4) = params
    slab = jnp.zeros((BSLAB_ROWS, LANE), jnp.float32)
    slab = slab.at[0, :NUM_HIDDEN_SH].set(b1.reshape(-1))
    slab = slab.at[1, :NUM_HIDDEN_SH].set(b2.reshape(-1))
    slab = slab.at[2, :NUM_HIDDEN_SH].set(b3.reshape(-1))
    slab = slab.at[3, :OUT_FEATURES].set(b4.reshape(-1))
    return slab


def dqn_mlp_kernel(x_ref, w_ref, b_ref, o_ref):
    # x_ref: (TB, 2) f32 batch tile
    # w_ref: (392, 128) bf16 packed weights (VMEM-resident across grid steps)
    # b_ref: (8, 128)  f32  packed biases
    x = x_ref[...]                                                # (TB, 2) f32

    w1 = w_ref[W1_ROW:W1_ROW + IN_FEATURES, :].astype(jnp.float32)  # (2, 128)
    w2 = w_ref[W2_ROW:W2_ROW + LANE, :]                             # (128,128) bf16
    w3 = w_ref[W3_ROW:W3_ROW + LANE, :]
    w4 = w_ref[W4_ROW:W4_ROW + LANE, :]

    b1 = b_ref[0:1, :]                                            # (1, 128) f32
    b2 = b_ref[1:2, :]
    b3 = b_ref[2:3, :]
    b4 = b_ref[3:4, :]

    # Layer 1 on the VPU: a K=2 MXU matmul is pure overhead, so use two
    # broadcast FMAs instead.  LeakyReLU(negative_slope=1) is the identity,
    # so no activation op is emitted for any layer.
    h = x[:, 0:1] * w1[0:1, :] + x[:, 1:2] * w1[1:2, :] + b1      # (TB,128) f32

    # Layers 2 & 3: bf16 MXU operands, f32 accumulation, f32 bias add.
    # Zero-padded rows/cols contribute exactly zero.
    h = jnp.dot(h.astype(jnp.bfloat16), w2,
                preferred_element_type=jnp.float32) + b2
    h = jnp.dot(h.astype(jnp.bfloat16), w3,
                preferred_element_type=jnp.float32) + b3

    # Output layer; only the first OUT_PAD lanes are written back to HBM
    # (real logits live in cols 0:3).
    out = jnp.dot(h.astype(jnp.bfloat16), w4,
                  preferred_element_type=jnp.float32) + b4
    o_ref[...] = out[:, :OUT_PAD].astype(o_ref.dtype)


@functools.partial(jax.jit, static_argnames=("block_batch",))
def dqn_forward(x, w_slab, b_slab, *, block_batch=1024):
    """x: (B, 2) float32. w_slab/b_slab: outputs of pack_weights/pack_biases."""
    B = x.shape[0]

    B8 = _round_up(max(B, 1), 8)
    if B8 >= 16:
        # Guarantee at least 2 grid steps so the "parallel" batch axis can
        # shard across both TensorCores on v7x; the extra ~0.35us step is
        # negligible on v5e/v6e.
        tb_cap = _round_up((B8 + 1) // 2, 8)
        TB = max(8, min(_round_up(block_batch, 8), tb_cap))
    else:
        TB = B8
    B_pad = _round_up(B8, TB)

    x_pad = jnp.pad(x.astype(jnp.float32), ((0, B_pad - B), (0, 0)))

    out = pl.pallas_call(
        dqn_mlp_kernel,
        out_shape=jax.ShapeDtypeStruct((B_pad, OUT_PAD), jnp.float32),
        grid_spec=pltpu.PrefetchScalarGridSpec(
            num_scalar_prefetch=0,
            grid=(B_pad // TB,),
            in_specs=[
                pl.BlockSpec((TB, IN_FEATURES), lambda i: (i, 0)),
                # Constant block index -> params stay resident in VMEM.
                pl.BlockSpec((WSLAB_ROWS, LANE), lambda i: (0, 0)),
                pl.BlockSpec((BSLAB_ROWS, LANE), lambda i: (0, 0)),
            ],
            out_specs=pl.BlockSpec((TB, OUT_PAD), lambda i: (i, 0)),
        ),
        compiler_params=pltpu.CompilerParams(
            dimension_semantics=("parallel",)),
    )(x_pad, w_slab, b_slab)

    return out[:B, :OUT_FEATURES]


def init_params(key):
    """Deterministic init mimicking nn.Linear default (uniform +/- 1/sqrt(fan_in))."""
    dims = [(IN_FEATURES, NUM_HIDDEN_SH),
            (NUM_HIDDEN_SH, NUM_HIDDEN_SH),
            (NUM_HIDDEN_SH, NUM_HIDDEN_SH),
            (NUM_HIDDEN_SH, OUT_FEATURES)]
    params = []
    for (fan_in, fan_out) in dims:
        key, kw, kb = jax.random.split(key, 3)
        bound = 1.0 / jnp.sqrt(jnp.float32(fan_in))
        w = jax.random.uniform(kw, (fan_in, fan_out), jnp.float32, -bound, bound)
        b = jax.random.uniform(kb, (1, fan_out), jnp.float32, -bound, bound)
        params.append((w, b))
    return params


def reference_forward(x, params, *, mirror_bf16=False):
    """Pure-JAX reference.

    mirror_bf16=True mirrors the kernel's bf16 MXU-operand quantization
    (weights + activation inputs to each matmul), with f32 accumulation and
    f32 bias adds — numerically matches the kernel up to accumulation order.
    """
    def q(a):
        return a.astype(jnp.bfloat16).astype(jnp.float32) if mirror_bf16 else a

    h = x.astype(jnp.float32)
    for i, (w, b) in enumerate(params):
        lhs = h if i == 0 else q(h)           # layer 1 is f32 on the VPU
        h = lhs @ q(w) + b.reshape(1, -1)
        if i < len(params) - 1:
            # Faithful LeakyReLU(negative_slope=1) == identity.
            h = jnp.where(h >= 0, h, 1.0 * h)
    return h


if __name__ == "__main__":
    key = jax.random.PRNGKey(0)
    key, kx = jax.random.split(key)

    batch = 8  # small batch; MountainCar observation dim = 2
    x = jax.random.normal(kx, (batch, IN_FEATURES), dtype=jnp.float32)

    params = init_params(key)

    # Pack once, outside the hot path; reuse the slabs for every forward.
    w_slab = pack_weights(params)
    b_slab = pack_biases(params)

    out = dqn_forward(x, w_slab, b_slab)
    out = jax.block_until_ready(out)
    assert out.shape == (batch, OUT_FEATURES)

    # Tight check vs a reference that mirrors the kernel's bf16 quantization.
    ref_mirror = reference_forward(x, params, mirror_bf16=True)
    assert jnp.allclose(out, ref_mirror, atol=1e-3, rtol=1e-3), \
        "mismatch vs bf16-mirrored reference"

    # Loose check vs the full-f32 module semantics (bf16 weights introduce
    # ~1e-2 relative error).
    ref_f32 = reference_forward(x, params, mirror_bf16=False)
    assert jnp.allclose(out, ref_f32, atol=5e-2, rtol=5e-2), \
        "mismatch vs f32 reference"

    print("KERNEL_OK")
</pallas_src>

<mosaic_0001>
module attributes {stable_mosaic.version = 11 : i64} {
  func.func @dqn_mlp_kernel(%arg0: i32, %arg1: memref<8x2xf32, #tpu.memory_space<vmem>>, %arg2: memref<392x128xbf16, #tpu.memory_space<vmem>>, %arg3: memref<8x128xf32, #tpu.memory_space<vmem>>, %arg4: memref<8x8xf32, #tpu.memory_space<vmem>>) attributes {dimension_semantics = [#tpu.dimension_semantics<parallel>], iteration_bounds = array<i64: 1>, scalar_prefetch = 0 : i64, scratch_operands = 0 : i64, tpu.core_type = #tpu.core_type<tc>, window_params = [{transform_indices = @transform_0, window_bounds = array<i64: 8, 2>}, {pipeline_mode = #tpu.pipeline_mode<synchronous>, transform_indices = @transform_1, window_bounds = array<i64: 392, 128>}, {pipeline_mode = #tpu.pipeline_mode<synchronous>, transform_indices = @transform_2, window_bounds = array<i64: 8, 128>}, {transform_indices = @transform_3, window_bounds = array<i64: 8, 8>}]} {
    %c0 = arith.constant 0 : index
    %c0_0 = arith.constant 0 : index
    %0 = vector.load %arg1[%c0, %c0_0] : memref<8x2xf32, #tpu.memory_space<vmem>>, vector<8x2xf32>
    %c0_1 = arith.constant 0 : index
    %c0_2 = arith.constant 0 : index
    %1 = vector.load %arg2[%c0_1, %c0_2] : memref<392x128xbf16, #tpu.memory_space<vmem>>, vector<2x128xbf16>
    %2 = arith.extf %1 : vector<2x128xbf16> to vector<2x128xf32>
    %c8 = arith.constant 8 : index
    %c0_3 = arith.constant 0 : index
    %3 = vector.load %arg2[%c8, %c0_3] : memref<392x128xbf16, #tpu.memory_space<vmem>>, vector<128x128xbf16>
    %c136 = arith.constant 136 : index
    %c0_4 = arith.constant 0 : index
    %4 = vector.load %arg2[%c136, %c0_4] : memref<392x128xbf16, #tpu.memory_space<vmem>>, vector<128x128xbf16>
    %c264 = arith.constant 264 : index
    %c0_5 = arith.constant 0 : index
    %5 = vector.load %arg2[%c264, %c0_5] : memref<392x128xbf16, #tpu.memory_space<vmem>>, vector<128x128xbf16>
    %c0_6 = arith.constant 0 : index
    %c0_7 = arith.constant 0 : index
    %6 = vector.load %arg3[%c0_6, %c0_7] : memref<8x128xf32, #tpu.memory_space<vmem>>, vector<1x128xf32>
    %c1 = arith.constant 1 : index
    %c0_8 = arith.constant 0 : index
    %7 = vector.load %arg3[%c1, %c0_8] : memref<8x128xf32, #tpu.memory_space<vmem>>, vector<1x128xf32>
    %c2 = arith.constant 2 : index
    %c0_9 = arith.constant 0 : index
    %8 = vector.load %arg3[%c2, %c0_9] : memref<8x128xf32, #tpu.memory_space<vmem>>, vector<1x128xf32>
    %c3 = arith.constant 3 : index
    %c0_10 = arith.constant 0 : index
    %9 = vector.load %arg3[%c3, %c0_10] : memref<8x128xf32, #tpu.memory_space<vmem>>, vector<1x128xf32>
    %10 = vector.extract_strided_slice %0 {offsets = [0, 0], sizes = [8, 1], strides = [1, 1]} : vector<8x2xf32> to vector<8x1xf32>
    %11 = vector.extract_strided_slice %2 {offsets = [0, 0], sizes = [1, 128], strides = [1, 1]} : vector<2x128xf32> to vector<1x128xf32>
    %12 = vector.broadcast %10 : vector<8x1xf32> to vector<8x128xf32>
    %13 = vector.broadcast %11 : vector<1x128xf32> to vector<8x128xf32>
    %14 = arith.mulf %12, %13 : vector<8x128xf32>
    %15 = vector.extract_strided_slice %0 {offsets = [0, 1], sizes = [8, 1], strides = [1, 1]} : vector<8x2xf32> to vector<8x1xf32>
    %16 = vector.extract_strided_slice %2 {offsets = [1, 0], sizes = [1, 128], strides = [1, 1]} : vector<2x128xf32> to vector<1x128xf32>
    %17 = vector.broadcast %15 : vector<8x1xf32> to vector<8x128xf32>
    %18 = vector.broadcast %16 : vector<1x128xf32> to vector<8x128xf32>
    %19 = arith.mulf %17, %18 : vector<8x128xf32>
    %20 = arith.addf %14, %19 : vector<8x128xf32>
    %21 = vector.broadcast %6 : vector<1x128xf32> to vector<8x128xf32>
    %22 = arith.addf %20, %21 : vector<8x128xf32>
    %23 = arith.truncf %22 : vector<8x128xf32> to vector<8x128xbf16>
    %cst = arith.constant dense<0.000000e+00> : vector<8x128xf32>
    %24 = tpu.matmul %23, %3, %cst {dimension_numbers = #tpu.dot_dimension_numbers<[1], [0], [0], [1], [0, 0, 1, 1], [], []>} : vector<8x128xbf16>, vector<128x128xbf16>, vector<8x128xf32> -> vector<8x128xf32>
    %25 = vector.broadcast %7 : vector<1x128xf32> to vector<8x128xf32>
    %26 = arith.addf %24, %25 : vector<8x128xf32>
    %27 = arith.truncf %26 : vector<8x128xf32> to vector<8x128xbf16>
    %cst_11 = arith.constant dense<0.000000e+00> : vector<8x128xf32>
    %28 = tpu.matmul %27, %4, %cst_11 {dimension_numbers = #tpu.dot_dimension_numbers<[1], [0], [0], [1], [0, 0, 1, 1], [], []>} : vector<8x128xbf16>, vector<128x128xbf16>, vector<8x128xf32> -> vector<8x128xf32>
    %29 = vector.broadcast %8 : vector<1x128xf32> to vector<8x128xf32>
    %30 = arith.addf %28, %29 : vector<8x128xf32>
    %31 = arith.truncf %30 : vector<8x128xf32> to vector<8x128xbf16>
    %cst_12 = arith.constant dense<0.000000e+00> : vector<8x128xf32>
    %32 = tpu.matmul %31, %5, %cst_12 {dimension_numbers = #tpu.dot_dimension_numbers<[1], [0], [0], [1], [0, 0, 1, 1], [], []>} : vector<8x128xbf16>, vector<128x128xbf16>, vector<8x128xf32> -> vector<8x128xf32>
    %33 = vector.broadcast %9 : vector<1x128xf32> to vector<8x128xf32>
    %34 = arith.addf %32, %33 : vector<8x128xf32>
    %35 = vector.extract_strided_slice %34 {offsets = [0, 0], sizes = [8, 8], strides = [1, 1]} : vector<8x128xf32> to vector<8x8xf32>
    %c0_13 = arith.constant 0 : index
    %c0_14 = arith.constant 0 : index
    %36 = vector.load %arg4[%c0_13, %c0_14] : memref<8x8xf32, #tpu.memory_space<vmem>>, vector<8x8xf32>
    tpu.vector_store %arg4[%c0_13, %c0_14], %35 {strides = array<i32>} : memref<8x8xf32, #tpu.memory_space<vmem>>, vector<8x8xf32>,
    return
  }
  func.func @transform_0(%arg0: i32) -> (i32, i32) {
    %c0_i32 = arith.constant 0 : i32
    %c0_i32_0 = arith.constant 0 : i32
    return %arg0, %c0_i32 : i32, i32
  }
  func.func @transform_1(%arg0: i32) -> (i32, i32) {
    %c0_i32 = arith.constant 0 : i32
    %c0_i32_0 = arith.constant 0 : i32
    %c0_i32_1 = arith.constant 0 : i32
    return %c0_i32, %c0_i32_0 : i32, i32
  }
  func.func @transform_2(%arg0: i32) -> (i32, i32) {
    %c0_i32 = arith.constant 0 : i32
    %c0_i32_0 = arith.constant 0 : i32
    %c0_i32_1 = arith.constant 0 : i32
    return %c0_i32, %c0_i32_0 : i32, i32
  }
  func.func @transform_3(%arg0: i32) -> (i32, i32) {
    %c0_i32 = arith.constant 0 : i32
    %c0_i32_0 = arith.constant 0 : i32
    return %arg0, %c0_i32 : i32, i32
  }
}

</mosaic_0001>

<bundles_post_ra>
// kernel: dqn_forward.1
= control target key start
LH: loop header
LB: loop body
LE: loop exit
PB: predicated region body
PF: predicated region fallthrough
CT: control target
= control target key end

     0   :  { %8 = vsyncpa [#allocation3], 0  ;;  %s565_s12 = smov [#allocation2]   ;;  %s643_s0 = inlined_call_operand.vmem [shape: f32[8,2], index: 0, kind: input, shape index: {}]   ;;  %s644_s1 = inlined_call_operand.hbm [shape: bf16[392,128], index: 1, kind: input, shape index: {}]   ;;  %s645_s2 = inlined_call_operand.vmem [shape: f32[8,128], index: 2, kind: input, shape index: {}]   ;;  %s646_s3 = inlined_call_operand.vmem [shape: f32[8,8], index: 3, kind: output, shape index: {}]  }
   0x1   :  { %s16_s13 = sshll.u32 %s565_s12, 4  ;;  %s17_s13 = int_to_ptr.vmem [resolvable:$true] %s16_s13 }
   0x2   :  { %s551_s14 = scalar_lea.vmem %s17_s13, 3136  ;;  %p556_p1 = scmp.lt.s32.totalorder %s17_s13, %s17_s13 }
   0x3   :  { %p552_p0 = scmp.ne.s32.totalorder %s17_s13, %s551_s14  ;;  %p557_p2 = scmp.lt.s32.totalorder %s551_s14, %s551_s14 }
   0x5   :  { %p558_p3 = por %p557_p2, %p556_p1 }
   0x7   :  { %p559_p4 = pnand %p558_p3, %p552_p0 }
   0x9   :  { %562 = shalt.err (!%p559_p4)
}
   0xa   :  { %s566_s15 = smov 64   ;;  %s567_s16 = smov 4  }
   0xb   :  { %22 = dma.hbm_to_vmem [thread:$0]  %s644_s1, 3136, %s17_s13, [#allocation3], %s566_s15, %s566_s15, %s567_s16  }
   0xc   :  { %563 = dma.done.wait [#allocation3], 3136  }
   0xd   :  { %564 = vsyncadd [#allocation3], 4294964160  ;;  %v568_v0 = vmov 0   ;;  %v569_v1 = vmov 0.0   ;;  %v29_v2 = vld [vmem:[%s643_s0] sm:$0xff]  ;;  %v520_v4 = vld [vmem:[#allocation2 + $0x34] sm:$0xff]   ;;  %v89_v19 = vlaneseq }
   0xe   :  { %517 = vset.pattern.permute.xlu0 %v568_v0  ;;  %450 = vmatprep.subr.bf16.mxu0 %v569_v1  ;;  %v519_v3 = vld [vmem:[#allocation2 + $0x3c] sm:$0xff]   ;;  %v570_v5 = vmov 1   ;;  %vm571_vm0 = vmmov 0   ;;  %v521_v6 = vld [vmem:[#allocation2 + $0x2c] sm:$0xff]   ;;  %v522_v8 = vld [vmem:[#allocation2 + $0x24] sm:$0xff]   ;;  %vm388_vm1 = vcmask 64512  }
   0xf   :  { %470 = vmatprep.subr.bf16.mxu1 %v569_v1  ;;  %86 = vperm.xlu0 %517, %v29_v2   ;;  %v527_v7 = vld [vmem:[#allocation2 + $0x7c] sm:$0xff]   ;;  %v528_v9 = vld [vmem:[#allocation2 + $0x74] sm:$0xff]   ;;  %v529_v11 = vld [vmem:[#allocation2 + $0x6c] sm:$0xff]   ;;  %v90_v20 = vshrl.u32 %v89_v19, 7 }
  0x10   :  { %451 = vmatpush3.bf16.msra.mxu0 %v519_v3  ;;  %466 = vmatprep.mubr.msk.bf16.mxu0 %vm571_vm0, %v569_v1  ;;  %v523_v10 = vld [vmem:[#allocation2 + $0x1c] sm:$0xff]   ;;  %v524_v12 = vld [vmem:[#allocation2 + $0x14] sm:$0xff]   ;;  %v530_v13 = vld [vmem:[#allocation2 + $0x64] sm:$0xff]  }
  0x11   :  { %452 = vmatprep.subr.bf16.mxu0 %v569_v1  ;;  %486 = vmatprep.mubr.msk.bf16.mxu1 %vm571_vm0, %v569_v1  ;;  %v525_v14 = vld [vmem:[#allocation2 + $0xc] sm:$0xff]   ;;  %v531_v15 = vld [vmem:[#allocation2 + $0x5c] sm:$0xff]   ;;  %v526_v16 = vld [vmem:[#allocation2 + $0x4] sm:$0xff]   ;;  %v91_v23 = vsub.s32 0, %v90_v20  ;;  %v100_v24 = vsub.s32 1, %v90_v20 }
  0x12   :  { %471 = vmatpush3.bf16.msra.mxu1 %v527_v7  ;;  %v532_v17 = vld [vmem:[#allocation2 + $0x54] sm:$0xff]   ;;  %v533_v18 = vld [vmem:[#allocation2 + $0x4c] sm:$0xff]   ;;  %v30_v21 = vld [vmem:[#allocation2] sm:$0x1] }
  0x13   :  { %518 = vset.pattern.permute.xlu0 %v570_v5  ;;  %472 = vmatprep.subr.bf16.mxu1 %v569_v1  ;;  %v31_v22 = vunpack.c.l.bf16 %v30_v21  ;;  %v395_v31 = vld [vmem:[%s645_s2] ss:$0 sm:$0xff]  ;;  %v534_v35 = vld [vmem:[#allocation2 + $0x44] sm:$0xff]   ;;  %v536_v37 = vld [vmem:[#allocation2 + $0xb4] sm:$0xff]  }
  0x14   :  { %95 = vperm.xlu0 %518, %v29_v2   ;;  %453 = vmatpush3.bf16.msra.mxu0 %v520_v4  ;;  %v535_v36 = vld [vmem:[#allocation2 + $0xbc] sm:$0xff]   ;;  %v537_v38 = vld [vmem:[#allocation2 + $0xac] sm:$0xff]   ;;  %v538_v39 = vld [vmem:[#allocation2 + $0xa4] sm:$0xff]  }
  0x15   :  { %454 = vmatprep.subr.bf16.mxu0 %v569_v1  ;;  %v92_v26 = vrot.slane %v31_v22, %v91_v23  ;;  %v101_v27 = vrot.slane %v31_v22, %v100_v24  ;;  %v539_v40 = vld [vmem:[#allocation2 + $0x9c] sm:$0xff]   ;;  %v540_v41 = vld [vmem:[#allocation2 + $0x94] sm:$0xff]   ;;  %v541_v42 = vld [vmem:[#allocation2 + $0x8c] sm:$0xff]  }
  0x16   :  { %473 = vmatpush3.bf16.msra.mxu1 %v528_v9  ;;  %v396_v43 = vld [vmem:[%s645_s2 + $0x1] ss:$0 sm:$0xff]  ;;  %v542_v50 = vld [vmem:[#allocation2 + $0x84] sm:$0xff]   ;;  %v405_v51 = vld [vmem:[%s645_s2 + $0x2] ss:$0 sm:$0xff] }
  0x17   :  { %474 = vmatprep.subr.bf16.mxu1 %v569_v1  ;;  %v414_v58 = vld [vmem:[%s645_s2 + $0x3] ss:$0 sm:$0xff] }
  0x18   :  { %455 = vmatpush3.bf16.msra.mxu0 %v521_v6 }
  0x19   :  { %456 = vmatprep.subr.bf16.mxu0 %v569_v1 }
  0x1a   :  { %475 = vmatpush3.bf16.msra.mxu1 %v529_v11 }
  0x1b   :  { %476 = vmatprep.subr.bf16.mxu1 %v569_v1 }
  0x1c   :  { %457 = vmatpush3.bf16.msra.mxu0 %v522_v8 }
  0x1d   :  { %458 = vmatprep.subr.bf16.mxu0 %v569_v1 }
  0x1e   :  { %477 = vmatpush3.bf16.msra.mxu1 %v530_v13 }
  0x1f   :  { %478 = vmatprep.subr.bf16.mxu1 %v569_v1 }
  0x20   :  { %459 = vmatpush3.bf16.msra.mxu0 %v523_v10 }
  0x21   :  { %460 = vmatprep.subr.bf16.mxu0 %v569_v1 }
  0x22   :  { %479 = vmatpush3.bf16.msra.mxu1 %v531_v15 }
  0x23   :  { %480 = vmatprep.subr.bf16.mxu1 %v569_v1 }
  0x24   :  { %461 = vmatpush3.bf16.msra.mxu0 %v524_v12 }
  0x25   :  { %462 = vmatprep.subr.bf16.mxu0 %v569_v1 }
  0x26   :  { %481 = vmatpush3.bf16.msra.mxu1 %v532_v17 }
  0x27   :  { %482 = vmatprep.subr.bf16.mxu1 %v569_v1 }
  0x28   :  { %463 = vmatpush3.bf16.msra.mxu0 %v525_v14 }
  0x29   :  { %464 = vmatprep.subr.bf16.mxu0 %v569_v1 }
  0x2a   :  { %483 = vmatpush3.bf16.msra.mxu1 %v533_v18 }
  0x2b   :  { %484 = vmatprep.subr.bf16.mxu1 %v569_v1 }
  0x2c   :  { %465 = vmatpush3.bf16.msra.mxu0 %v526_v16 }
  0x2d   :  { %490 = vmatprep.subr.bf16.mxu0 %v569_v1 }
  0x2e   :  { %485 = vmatpush3.bf16.msra.mxu1 %v534_v35 }
  0x8a   :  { %v87_v25 = vpop.permute.xlu0 %86 }
  0x8b   :  { %v93_v29 = vmul.f32 %v92_v26, %v87_v25 }
  0x8f   :  { %v96_v28 = vpop.permute.xlu0 %95 }
  0x90   :  { %v102_v30 = vmul.f32 %v101_v27, %v96_v28 }
  0x92   :  { %v103_v32 = vadd.f32 %v102_v30, %v93_v29 }
  0x94   :  { %v108_v33 = vadd.f32 %v395_v31, %v103_v32 }
  0x96   :  { %v109_v34 = vpack.c.bf16 %v108_v33, %v108_v33 }
  0x98   :  { %467 = vmatmul.mubr.bf16.vlgmr.msra.gmra.mxu0 %v109_v34 }
  0x99   :  { %506 = vmatprep.mubr.msk.bf16.mxu0 %vm571_vm0, %v569_v1  ;;  %491 = vmatpush3.bf16.msra.mxu0 %v535_v36 }
  0x9a   :  { %492 = vmatprep.subr.bf16.mxu0 %v569_v1 }
  0x9d   :  { %493 = vmatpush3.bf16.msra.mxu0 %v536_v37 }
  0x9e   :  { %494 = vmatprep.subr.bf16.mxu0 %v569_v1 }
  0xa1   :  { %495 = vmatpush3.bf16.msra.mxu0 %v537_v38 }
  0xa2   :  { %496 = vmatprep.subr.bf16.mxu0 %v569_v1 }
  0xa5   :  { %497 = vmatpush3.bf16.msra.mxu0 %v538_v39 }
  0xa6   :  { %498 = vmatprep.subr.bf16.mxu0 %v569_v1 }
  0xa9   :  { %499 = vmatpush3.bf16.msra.mxu0 %v539_v40 }
  0xaa   :  { %500 = vmatprep.subr.bf16.mxu0 %v569_v1 }
  0xad   :  { %501 = vmatpush3.bf16.msra.mxu0 %v540_v41 }
  0xae   :  { %502 = vmatprep.subr.bf16.mxu0 %v569_v1 }
  0xb1   :  { %503 = vmatpush3.bf16.msra.mxu0 %v541_v42 }
  0xb2   :  { %504 = vmatprep.subr.bf16.mxu0 %v569_v1 }
  0xb5   :  { %505 = vmatpush3.bf16.msra.mxu0 %v542_v50 }
 0x158   :  { %v196_v44 = vpop.f32.mrf.mxu0 }
 0x159   :  { %v197_v45 = vadd.f32 %v396_v43, %v196_v44 }
 0x15a   :  { %v468_v46 = vpop.f32.mrf.mxu0 }
 0x15b   :  { %v202_v47 = vpack.c.bf16 %v197_v45, %v197_v45 }
 0x15c   :  { %v199_v48 = vpop.f32.mrf.mxu0 }
 0x15d   :  { %487 = vmatmul.mubr.bf16.vlgmr.msra.gmra.mxu1 %v202_v47 }
 0x15e   :  { %v469_v49 = vpop.f32.mrf.mxu0 }
 0x21d   :  { %v289_v52 = vpop.f32.mrf.mxu1 }
 0x21e   :  { %v290_v53 = vadd.f32 %v405_v51, %v289_v52 }
 0x21f   :  { %v488_v54 = vpop.f32.mrf.mxu1 }
 0x220   :  { %v295_v55 = vpack.c.bf16 %v290_v53, %v290_v53 }
 0x221   :  { %v292_v56 = vpop.f32.mrf.mxu1 }
 0x222   :  { %507 = vmatmul.mubr.bf16.vlgmr.msra.gmra.mxu0 %v295_v55 }
 0x223   :  { %v489_v57 = vpop.f32.mrf.mxu1 }
 0x2e2   :  { %v382_v59 = vpop.f32.mrf.mxu0 }
 0x2e3   :  { %v383_v60 = vadd.f32 %v414_v58, %v382_v59 }
 0x2e4   :  { %v508_v61 = vpop.f32.mrf.mxu0 }
 0x2e5   :  { %389 = vst.msk [vmem:[%s646_s3] sm:$0xff] %vm388_vm1, %v383_v60 }
 0x2e6   :  { %v385_v62 = vpop.f32.mrf.mxu0 }
 0x2e8   :  { %v509_v63 = vpop.f32.mrf.mxu0 }
 0x2e9   :  { %394 = vsyncpa [#allocation3], 1 }

</bundles_post_ra>
